<compile_context>
chip_gen: v7x
topology: tpu7x:2x2x1
jax: 0.10.0
libtpu: 0.0.40
codegen_flags: <defaults>
</compile_context>

<pallas_src>
import jax
import jax.numpy as jnp
from jax import lax
from jax.experimental import pallas as pl
from jax.experimental.pallas import tpu as pltpu


def _make_dc_ce_kernel(C, TS, S, NS, NSH, tail_mask, tile_skip):
    """Build the per-(batch, half, spatial-tile) statistics kernel.

    Refs:
      logits_ref: (1, C, TS)   native dtype (f32/bf16), cast to f32 in-kernel
      target_ref: (1, 1, TS)   integer class ids (cast to int32 in-kernel)
      stats_ref : (1, 1, 4, C) f32 accumulator, resident across the spatial axis
                  rows: [intersect, prob_sum, target_count, ce_partial]
    """

    def kernel(logits_ref, target_ref, stats_ref):
        h = pl.program_id(1)
        s = pl.program_id(2)
        g = h * NSH + s                       # global spatial-tile index

        @pl.when(s == 0)
        def _():
            stats_ref[...] = jnp.zeros_like(stats_ref)

        def accumulate():
            x = logits_ref[0].astype(jnp.float32)        # (C, TS)
            t = target_ref[0].astype(jnp.int32)          # (1, TS)

            if tail_mask:
                lane = lax.broadcasted_iota(jnp.int32, (1, TS), 1)
                valid = (g * TS + lane) < S              # (1, TS) bool
                # Zero garbage lanes of the ragged tail tile before exp so no
                # NaN/Inf can leak into the sums.
                x = jnp.where(valid, x, 0.0)

            # Softmax over channel (sublane) axis; single reciprocal per voxel.
            m = jnp.max(x, axis=0, keepdims=True)        # (1, TS)
            e = jnp.exp(x - m)                           # (C, TS)
            se = jnp.sum(e, axis=0, keepdims=True)       # (1, TS)
            inv = 1.0 / se                               # 1 recip/voxel, not C
            p = e * inv                                  # softmax probs
            lse = m + jnp.log(se)                        # logsumexp for CE

            # one-hot target (mirrors torch scatter_ along dim 1)
            cls = lax.broadcasted_iota(jnp.int32, (C, TS), 0)
            onehot = (cls == t).astype(jnp.float32)      # (C, TS)

            if tail_mask:
                validf = valid.astype(jnp.float32)
                onehot = onehot * validf
                p = p * validf

            intersect = jnp.sum(p * onehot, axis=1)[None, :]          # (1, C)
            prob_sum = jnp.sum(p, axis=1)[None, :]
            count = jnp.sum(onehot, axis=1)[None, :]
            # CE contribution of voxels whose label is class c:
            #   sum_{n: t_n == c} (lse_n - logit_{c,n})
            ce_part = jnp.sum(onehot * (lse - x), axis=1)[None, :]

            # Row-wise accumulation (no per-step jnp.stack relayout); stores hit
            # the VMEM-resident output block, HBM writeback happens once per
            # (b, half) when the grid moves on.
            stats_ref[0, 0, 0:1, :] += intersect
            stats_ref[0, 0, 1:2, :] += prob_sum
            stats_ref[0, 0, 2:3, :] += count
            stats_ref[0, 0, 3:4, :] += ce_part

        if tile_skip:
            # Halves may own a padded number of tiles; skip out-of-range tiles.
            pl.when(g < NS)(accumulate)
        else:
            accumulate()

    return kernel


def dc_ce_loss(logits, target, *, tile_s=None, num_spatial_splits=2,
               vmem_budget_bytes=16 * 1024 * 1024):
    """DC_CE forward. logits: (B,C,D,H,W) float, target: (B,1,D,H,W) int."""
    B, C, D, H, W = logits.shape
    S = D * H * W

    # Reshapes are views; keep native dtypes (no extra HBM casting pass).
    x = logits.reshape(B, C, S)
    t = target.reshape(B, 1, S)

    logit_bytes = jnp.dtype(x.dtype).itemsize
    tgt_bytes = jnp.dtype(t.dtype).itemsize

    # Pick the largest spatial tile that fits the (double-buffered) VMEM budget.
    if tile_s is None:
        per_lane = 2 * (C * logit_bytes + tgt_bytes)     # 2x: double buffering
        ts = min(vmem_budget_bytes // per_lane, 32768)
    else:
        ts = int(tile_s)
    if ts >= S:
        ts = S                                # full-extent block (any S allowed)
    else:
        ts = max(128, (ts // 128) * 128)      # lane-aligned tile

    NS = pl.cdiv(S, ts)                                   # spatial tiles
    NH = max(1, min(int(num_spatial_splits), NS))         # megacore split (v7x)
    NSH = pl.cdiv(NS, NH)                                 # tiles per split
    tail_mask = (S % ts) != 0
    tile_skip = (NH * NSH) != NS

    block_bytes = ts * (C * logit_bytes + tgt_bytes)
    vmem_limit_bytes = int(min(48 * 1024 * 1024,
                               max(32 * 1024 * 1024, 4 * block_bytes)))

    def in_map(b, h, s):
        # Clamp: the last split may own fewer real tiles; clamped duplicate
        # reads are skipped in-kernel via `g < NS`.
        return (b, 0, jnp.minimum(h * NSH + s, NS - 1))

    def out_map(b, h, s):
        return (b, h, 0, 0)

    kernel = _make_dc_ce_kernel(C, ts, S, NS, NSH, tail_mask, tile_skip)

    stats = pl.pallas_call(
        kernel,
        out_shape=jax.ShapeDtypeStruct((B, NH, 4, C), jnp.float32),
        grid_spec=pltpu.PrefetchScalarGridSpec(
            num_scalar_prefetch=0,
            grid=(B, NH, NSH),
            in_specs=[
                pl.BlockSpec((1, C, ts), in_map),
                pl.BlockSpec((1, 1, ts), in_map),
            ],
            out_specs=pl.BlockSpec((1, 1, 4, C), out_map),
        ),
        compiler_params=pltpu.CompilerParams(
            dimension_semantics=("parallel", "parallel", "arbitrary"),
            vmem_limit_bytes=vmem_limit_bytes),
    )(x, t)

    stats = jnp.sum(stats, axis=1)            # merge spatial splits -> (B, 4, C)
    intersect = stats[:, 0, :]
    prob_sum = stats[:, 1, :]
    count = stats[:, 2, :]
    ce_part = stats[:, 3, :]

    eps = 1e-19
    dice = 2.0 * intersect / (prob_sum + count + eps)
    dc_loss = 1.0 - jnp.mean(dice)
    ce_loss = jnp.sum(ce_part) / (B * S)
    return ce_loss + dc_loss


def _reference(logits, target):
    """Pure-JAX reference of the PyTorch forward, for sanity checking."""
    B, C, D, H, W = logits.shape
    x = logits.astype(jnp.float32)
    t = target.reshape(B, 1, D, H, W).astype(jnp.int32)
    onehot = (jnp.arange(C).reshape(1, C, 1, 1, 1) == t).astype(jnp.float32)
    p = jax.nn.softmax(x, axis=1)
    sum_ax = (2, 3, 4)
    intersect = jnp.sum(p * onehot, axis=sum_ax)
    dice = 2.0 * intersect / (jnp.sum(p, axis=sum_ax)
                              + jnp.sum(onehot, axis=sum_ax) + 1e-19)
    dc = 1.0 - jnp.mean(dice)
    logits_2d = jnp.transpose(x, (0, 2, 3, 4, 1)).reshape(-1, C)
    tflat = t.reshape(-1)
    lse = jax.nn.logsumexp(logits_2d, axis=-1)
    ce = jnp.mean(lse - jnp.take_along_axis(
        logits_2d, tflat[:, None], axis=1)[:, 0])
    return ce + dc


if __name__ == "__main__":
    key = jax.random.PRNGKey(0)

    # Test 1: small clean shape, auto tile (single full-extent spatial block).
    B, C, D, H, W = 2, 4, 4, 8, 8            # S = 256
    k1, k2 = jax.random.split(key)
    logits = jax.random.normal(k1, (B, C, D, H, W), dtype=jnp.float32)
    target = jax.random.randint(k2, (B, 1, D, H, W), 0, C, dtype=jnp.int32)
    out = jax.block_until_ready(dc_ce_loss(logits, target))
    ref = jax.block_until_ready(_reference(logits, target))
    assert jnp.allclose(out, ref, rtol=1e-5, atol=1e-5), (out, ref)

    # Test 2: ragged spatial size + forced small tile -> exercises the tail
    # mask and the uneven megacore-half skip path.
    B2, C2, D2, H2, W2 = 1, 4, 5, 9, 7       # S = 315 (not a multiple of 128)
    k3, k4 = jax.random.split(k1)
    logits2 = jax.random.normal(k3, (B2, C2, D2, H2, W2), dtype=jnp.float32)
    target2 = jax.random.randint(k4, (B2, 1, D2, H2, W2), 0, C2, dtype=jnp.int32)
    out2 = jax.block_until_ready(dc_ce_loss(logits2, target2, tile_s=128))
    ref2 = jax.block_until_ready(_reference(logits2, target2))
    assert jnp.allclose(out2, ref2, rtol=1e-5, atol=1e-5), (out2, ref2)

    # Test 3: bf16 logits passed straight through (no wrapper f32 copy).
    logits3 = logits.astype(jnp.bfloat16)
    out3 = jax.block_until_ready(dc_ce_loss(logits3, target))
    ref3 = jax.block_until_ready(_reference(logits3, target))
    assert jnp.allclose(out3, ref3, rtol=1e-5, atol=1e-5), (out3, ref3)

    print("KERNEL_OK")
</pallas_src>

<mosaic_0001>
module attributes {stable_mosaic.version = 11 : i64} {
  func.func @kernel(%arg0: i32, %arg1: i32, %arg2: i32, %arg3: memref<1x4x256xf32, #tpu.memory_space<vmem>>, %arg4: memref<1x1x256xi32, #tpu.memory_space<vmem>>, %arg5: memref<1x1x4x4xf32, #tpu.memory_space<vmem>>) attributes {dimension_semantics = [#tpu.dimension_semantics<parallel>, #tpu.dimension_semantics<parallel>, #tpu.dimension_semantics<arbitrary>], iteration_bounds = array<i64: 2, 1, 1>, scalar_prefetch = 0 : i64, scratch_operands = 0 : i64, tpu.core_type = #tpu.core_type<tc>, window_params = [{transform_indices = @transform_0, window_bounds = array<i64: 1, 4, 256>}, {transform_indices = @transform_1, window_bounds = array<i64: 1, 1, 256>}, {transform_indices = @transform_2, window_bounds = array<i64: 1, 1, 4, 4>}]} {
    %c0_i32 = arith.constant 0 : i32
    %0 = arith.cmpi eq, %arg2, %c0_i32 : i32
    %1 = arith.extui %0 : i1 to i32
    %c0_i32_0 = arith.constant 0 : i32
    %2 = arith.cmpi ne, %1, %c0_i32_0 : i32
    scf.if %2 {
      %cst_41 = arith.constant 0.000000e+00 : f32
      %61 = vector.broadcast %cst_41 : f32 to vector<1x1x4x4xf32>
      %c0_42 = arith.constant 0 : index
      %c0_43 = arith.constant 0 : index
      %c0_44 = arith.constant 0 : index
      %c0_45 = arith.constant 0 : index
      %62 = vector.load %arg5[%c0_42, %c0_43, %c0_44, %c0_45] : memref<1x1x4x4xf32, #tpu.memory_space<vmem>>, vector<1x1x4x4xf32>
      tpu.vector_store %arg5[%c0_42, %c0_43, %c0_44, %c0_45], %61 {strides = array<i32>} : memref<1x1x4x4xf32, #tpu.memory_space<vmem>>, vector<1x1x4x4xf32>,
    } else {
    }
    %c0 = arith.constant 0 : index
    %c0_1 = arith.constant 0 : index
    %c0_2 = arith.constant 0 : index
    %3 = vector.load %arg3[%c0, %c0_1, %c0_2] : memref<1x4x256xf32, #tpu.memory_space<vmem>>, vector<1x4x256xf32>
    %4 = vector.shape_cast %3 : vector<1x4x256xf32> to vector<4x256xf32>
    %c0_3 = arith.constant 0 : index
    %c0_4 = arith.constant 0 : index
    %c0_5 = arith.constant 0 : index
    %5 = vector.load %arg4[%c0_3, %c0_4, %c0_5] : memref<1x1x256xi32, #tpu.memory_space<vmem>>, vector<1x1x256xi32>
    %6 = vector.shape_cast %5 : vector<1x1x256xi32> to vector<1x256xi32>
    %cst = arith.constant dense<0xFF800000> : vector<256xf32>
    %7 = vector.multi_reduction <maximumf>, %4, %cst [0] : vector<4x256xf32> to vector<256xf32>
    %8 = vector.shape_cast %7 : vector<256xf32> to vector<1x256xf32>
    %9 = vector.broadcast %8 : vector<1x256xf32> to vector<4x256xf32>
    %10 = arith.subf %4, %9 : vector<4x256xf32>
    %11 = math.exp %10 : vector<4x256xf32>
    %cst_6 = arith.constant dense<0.000000e+00> : vector<256xf32>
    %12 = vector.multi_reduction <add>, %11, %cst_6 [0] : vector<4x256xf32> to vector<256xf32>
    %13 = vector.shape_cast %12 : vector<256xf32> to vector<1x256xf32>
    %cst_7 = arith.constant 1.000000e+00 : f32
    %14 = vector.broadcast %cst_7 : f32 to vector<1x256xf32>
    %15 = arith.divf %14, %13 : vector<1x256xf32>
    %16 = vector.broadcast %15 : vector<1x256xf32> to vector<4x256xf32>
    %17 = arith.mulf %11, %16 : vector<4x256xf32>
    %18 = math.log %13 : vector<1x256xf32>
    %19 = arith.addf %8, %18 : vector<1x256xf32>
    %20 = tpu.iota {dimensions = array<i32: 0>} : vector<4x256xi32>
    %21 = vector.broadcast %6 : vector<1x256xi32> to vector<4x256xi32>
    %22 = arith.cmpi eq, %20, %21 : vector<4x256xi32>
    %23 = arith.extui %22 : vector<4x256xi1> to vector<4x256xi32>
    %24 = arith.sitofp %23 : vector<4x256xi32> to vector<4x256xf32>
    %25 = arith.mulf %17, %24 : vector<4x256xf32>
    %cst_8 = arith.constant dense<0.000000e+00> : vector<4xf32>
    %26 = vector.multi_reduction <add>, %25, %cst_8 [1] : vector<4x256xf32> to vector<4xf32>
    %27 = vector.shape_cast %26 : vector<4xf32> to vector<1x4xf32>
    %cst_9 = arith.constant dense<0.000000e+00> : vector<4xf32>
    %28 = vector.multi_reduction <add>, %17, %cst_9 [1] : vector<4x256xf32> to vector<4xf32>
    %29 = vector.shape_cast %28 : vector<4xf32> to vector<1x4xf32>
    %cst_10 = arith.constant dense<0.000000e+00> : vector<4xf32>
    %30 = vector.multi_reduction <add>, %24, %cst_10 [1] : vector<4x256xf32> to vector<4xf32>
    %31 = vector.shape_cast %30 : vector<4xf32> to vector<1x4xf32>
    %32 = vector.broadcast %19 : vector<1x256xf32> to vector<4x256xf32>
    %33 = arith.subf %32, %4 : vector<4x256xf32>
    %34 = arith.mulf %24, %33 : vector<4x256xf32>
    %cst_11 = arith.constant dense<0.000000e+00> : vector<4xf32>
    %35 = vector.multi_reduction <add>, %34, %cst_11 [1] : vector<4x256xf32> to vector<4xf32>
    %36 = vector.shape_cast %35 : vector<4xf32> to vector<1x4xf32>
    %c0_12 = arith.constant 0 : index
    %c0_13 = arith.constant 0 : index
    %c0_14 = arith.constant 0 : index
    %c0_15 = arith.constant 0 : index
    %37 = vector.load %arg5[%c0_12, %c0_13, %c0_14, %c0_15] : memref<1x1x4x4xf32, #tpu.memory_space<vmem>>, vector<1x1x1x4xf32>
    %38 = vector.shape_cast %37 : vector<1x1x1x4xf32> to vector<1x4xf32>
    %39 = arith.addf %38, %27 : vector<1x4xf32>
    %c0_16 = arith.constant 0 : index
    %c0_17 = arith.constant 0 : index
    %c0_18 = arith.constant 0 : index
    %c0_19 = arith.constant 0 : index
    %40 = vector.load %arg5[%c0_16, %c0_17, %c0_18, %c0_19] : memref<1x1x4x4xf32, #tpu.memory_space<vmem>>, vector<1x1x1x4xf32>
    %41 = vector.shape_cast %40 : vector<1x1x1x4xf32> to vector<1x4xf32>
    %42 = vector.shape_cast %39 : vector<1x4xf32> to vector<1x1x1x4xf32>
    tpu.vector_store %arg5[%c0_16, %c0_17, %c0_18, %c0_19], %42 {strides = array<i32>} : memref<1x1x4x4xf32, #tpu.memory_space<vmem>>, vector<1x1x1x4xf32>,
    %c0_20 = arith.constant 0 : index
    %c0_21 = arith.constant 0 : index
    %c1 = arith.constant 1 : index
    %c0_22 = arith.constant 0 : index
    %43 = vector.load %arg5[%c0_20, %c0_21, %c1, %c0_22] : memref<1x1x4x4xf32, #tpu.memory_space<vmem>>, vector<1x1x1x4xf32>
    %44 = vector.shape_cast %43 : vector<1x1x1x4xf32> to vector<1x4xf32>
    %45 = arith.addf %44, %29 : vector<1x4xf32>
    %c0_23 = arith.constant 0 : index
    %c0_24 = arith.constant 0 : index
    %c1_25 = arith.constant 1 : index
    %c0_26 = arith.constant 0 : index
    %46 = vector.load %arg5[%c0_23, %c0_24, %c1_25, %c0_26] : memref<1x1x4x4xf32, #tpu.memory_space<vmem>>, vector<1x1x1x4xf32>
    %47 = vector.shape_cast %46 : vector<1x1x1x4xf32> to vector<1x4xf32>
    %48 = vector.shape_cast %45 : vector<1x4xf32> to vector<1x1x1x4xf32>
    tpu.vector_store %arg5[%c0_23, %c0_24, %c1_25, %c0_26], %48 {strides = array<i32>} : memref<1x1x4x4xf32, #tpu.memory_space<vmem>>, vector<1x1x1x4xf32>,
    %c0_27 = arith.constant 0 : index
    %c0_28 = arith.constant 0 : index
    %c2 = arith.constant 2 : index
    %c0_29 = arith.constant 0 : index
    %49 = vector.load %arg5[%c0_27, %c0_28, %c2, %c0_29] : memref<1x1x4x4xf32, #tpu.memory_space<vmem>>, vector<1x1x1x4xf32>
    %50 = vector.shape_cast %49 : vector<1x1x1x4xf32> to vector<1x4xf32>
    %51 = arith.addf %50, %31 : vector<1x4xf32>
    %c0_30 = arith.constant 0 : index
    %c0_31 = arith.constant 0 : index
    %c2_32 = arith.constant 2 : index
    %c0_33 = arith.constant 0 : index
    %52 = vector.load %arg5[%c0_30, %c0_31, %c2_32, %c0_33] : memref<1x1x4x4xf32, #tpu.memory_space<vmem>>, vector<1x1x1x4xf32>
    %53 = vector.shape_cast %52 : vector<1x1x1x4xf32> to vector<1x4xf32>
    %54 = vector.shape_cast %51 : vector<1x4xf32> to vector<1x1x1x4xf32>
    tpu.vector_store %arg5[%c0_30, %c0_31, %c2_32, %c0_33], %54 {strides = array<i32>} : memref<1x1x4x4xf32, #tpu.memory_space<vmem>>, vector<1x1x1x4xf32>,
    %c0_34 = arith.constant 0 : index
    %c0_35 = arith.constant 0 : index
    %c3 = arith.constant 3 : index
    %c0_36 = arith.constant 0 : index
    %55 = vector.load %arg5[%c0_34, %c0_35, %c3, %c0_36] : memref<1x1x4x4xf32, #tpu.memory_space<vmem>>, vector<1x1x1x4xf32>
    %56 = vector.shape_cast %55 : vector<1x1x1x4xf32> to vector<1x4xf32>
    %57 = arith.addf %56, %36 : vector<1x4xf32>
    %c0_37 = arith.constant 0 : index
    %c0_38 = arith.constant 0 : index
    %c3_39 = arith.constant 3 : index
    %c0_40 = arith.constant 0 : index
    %58 = vector.load %arg5[%c0_37, %c0_38, %c3_39, %c0_40] : memref<1x1x4x4xf32, #tpu.memory_space<vmem>>, vector<1x1x1x4xf32>
    %59 = vector.shape_cast %58 : vector<1x1x1x4xf32> to vector<1x4xf32>
    %60 = vector.shape_cast %57 : vector<1x4xf32> to vector<1x1x1x4xf32>
    tpu.vector_store %arg5[%c0_37, %c0_38, %c3_39, %c0_40], %60 {strides = array<i32>} : memref<1x1x4x4xf32, #tpu.memory_space<vmem>>, vector<1x1x1x4xf32>,
    return
  }
  func.func @transform_0(%arg0: i32, %arg1: i32, %arg2: i32) -> (i32, i32, i32) {
    %c1_i32 = arith.constant 1 : i32
    %0 = arith.muli %arg1, %c1_i32 : i32
    %1 = arith.addi %0, %arg2 : i32
    %c0_i32 = arith.constant 0 : i32
    %2 = arith.minsi %1, %c0_i32 : i32
    %c0_i32_0 = arith.constant 0 : i32
    %c0_i32_1 = arith.constant 0 : i32
    return %arg0, %c0_i32_0, %2 : i32, i32, i32
  }
  func.func @transform_1(%arg0: i32, %arg1: i32, %arg2: i32) -> (i32, i32, i32) {
    %c1_i32 = arith.constant 1 : i32
    %0 = arith.muli %arg1, %c1_i32 : i32
    %1 = arith.addi %0, %arg2 : i32
    %c0_i32 = arith.constant 0 : i32
    %2 = arith.minsi %1, %c0_i32 : i32
    %c0_i32_0 = arith.constant 0 : i32
    %c0_i32_1 = arith.constant 0 : i32
    return %arg0, %c0_i32_0, %2 : i32, i32, i32
  }
  func.func @transform_2(%arg0: i32, %arg1: i32, %arg2: i32) -> (i32, i32, i32, i32) {
    %c0_i32 = arith.constant 0 : i32
    %c0_i32_0 = arith.constant 0 : i32
    %c0_i32_1 = arith.constant 0 : i32
    return %arg0, %arg1, %c0_i32, %c0_i32_0 : i32, i32, i32, i32
  }
}

</mosaic_0001>

<bundles_post_ra>
// kernel: tpu_custom_call.1
= control target key start
LH: loop header
LB: loop body
LE: loop exit
PB: predicated region body
PF: predicated region fallthrough
CT: control target
= control target key end

     0   :  { %7 = vsyncpa [#allocation3], 0  ;;  %s1063_s0 = inlined_call_operand.hbm [shape: f32[2,4,256], index: 0, kind: input, shape index: {}]   ;;  %s1064_s1 = inlined_call_operand.hbm [shape: s32[2,1,256], index: 1, kind: input, shape index: {}]   ;;  %s1065_s2 = inlined_call_operand.hbm [shape: f32[2,1,4,4], index: 2, kind: output, shape index: {}]  }
   0x1   :  { %9 = vsyncpa [#allocation3 + $0x1], 0 }
   0x2   :  { %10 = vsyncpa [#allocation6], 0 }
   0x3   :  { %12 = vsyncpa [#allocation6 + $0x1], 0 }
   0x4   :  { %13 = vsyncpa [#allocation4], 0 }
   0x5   :  { %15 = vsyncpa [#allocation4 + $0x1], 0  ;;  %s802_s9 = smov 0   ;;  %s804_s10 = smov 0  }
   0x6   :  { %s806_s11 = smov 0   ;;  %s808_s12 = smov 0  }
   0x7   :  { %s810_s13 = smov 0   ;;  %s812_s14 = smov 0  }
   0x8 LB: > { %s534_s15 = sadd.s32 4294967295, %s781_s14   ;;  %s535_s16 = sadd.s32 4294967294, %s781_s14   ;;  %s781_s14 = sphi %s812_s14, %s21_s14   ;;  %s777_s13 = sphi %s810_s13, %s1085_s13   ;;  %s773_s12 = sphi %s808_s12, %s1084_s12   ;;  %s769_s11 = sphi %s806_s11, %s1083_s11   ;;  %s765_s10 = sphi %s804_s10, %s1082_s10   ;;  %s761_s9 = sphi %s802_s9, %s1081_s9  }
   0x9   : > { %s40_s17 = sadd.s32 1, %s777_s13  ;;  %s55_s18 = sadd.s32 1, %s769_s11 }
   0xa   : > { %p42_p0 = scmp.ge.s32.totalorder %s40_s17, 2  ;;  %p62_p1 = scmp.ne.s32.totalorder %s769_s11, %s765_s10 }
   0xb   : > { %p63_p2 = scmp.eq.s32.totalorder %s781_s14, 0  ;;  %p68_p3 = scmp.ne.s32.totalorder %s765_s10, %s761_s9 }
   0xc   : > { %s1087_s17 = smov (%p42_p0, %s40_s17), 0  ;;  %p69_p5 = scmp.eq.s32.totalorder %s534_s15, 0 }
   0xd   : > { %p843_p4 = por %p63_p2, %p62_p1  ;;  %s50_s20 = ssub.s32 %s777_s13, %s1087_s17 }
   0xe   : > { %p128_p6 = scmp.eq.s32.totalorder %s534_s15, 1  ;;  %p53_p7 = scmp.eq.s32.totalorder %s50_s20, 0 }
   0xf   : > { %p849_p8 = por %p69_p5, %p68_p3  ;;  %p134_p10 = scmp.eq.s32.totalorder %s535_s16, 1 }
  0x10   : > { %p853_p9 = por %p128_p6, %p62_p1  ;;  %p573_p13 = scmp.lt.s32.totalorder %s781_s14, 2 }
  0x11   : > { %s1069_s21 = scalar_select %p849_p8, 1, 0 }
  0x12   : > { %s1070_s22 = scalar_select %p853_p9, 1, 0 }
  0x13   : > { %s858_s23 = scalar_select %p53_p7, %s769_s11, %s55_s18  }
  0x14   : > { %p860_p11 = por %p134_p10, %p68_p3  ;;  %s867_s25 = sand.u32 1, %s769_s11  }
  0x15   : > { %s538_s26 = sshll.u32 %s867_s25, 3  ;;  %s554_s27 = sshll.u32 %s777_s13, 7 }
  0x16   : > { %s1071_s24 = scalar_select %p860_p11, 1, 0 }
  0x17   : > { %s874_s30 = scalar_lea.hbm %s1063_s0, %s554_s27  ;;  %s158_s3 = scalar_lea.vmem [#allocation2], %s538_s26 }
  0x18   : > { %s171_s4 = sshll.u32 %s158_s3, 4  ;;  %p880_p0 = pnand %p573_p13, %p843_p4  ;;  %s876_s4 = int_to_ptr.vmem [resolvable:$true] %s171_s4 }
  0x19   : > { %s155_s6 = scalar_lea.sflag [#allocation3], %s867_s25  ;;  %s635_s7 = scalar_lea.hbm %s874_s30, 128 }
  0x1a   : > { %p636_p3 = scmp.ne.s32.totalorder %s874_s30, %s635_s7  ;;  %p637_p5 = pneg %p880_p0 }
  0x1b   : > { %s640_s16 = scalar_lea.hbm %s1063_s0, 256  ;;  %p641_p4 = scmp.lt.u32.totalorder %s874_s30, %s1063_s0 }
  0x1c   : > { %p638_p6 = pnand %p637_p5, %p636_p3  ;;  %p642_p10 = scmp.lt.u32.totalorder %s640_s16, %s635_s7 }
  0x1d   : > { %p644_p12 = scmp.lt.u32.totalorder %s635_s7, %s874_s30 }
  0x1e   : > { %p639_p7 = pneg %p638_p6  ;;  %p643_p13 = por %p642_p10, %p641_p4 }
  0x20   : > { %p645_p1 = por %p644_p12, %p643_p13 }
  0x22   : > { %p646_p2 = pnand %p645_p1, %p639_p7 }
  0x24   : > { %649 = shalt.err (!%p646_p2)
}
  0x25   : > { %s650_s20 = scalar_lea.vmem %s876_s4, 128  ;;  %s783_s26 = smov [#allocation2]  }
  0x26   : > { %p651_p3 = scmp.ne.s32.totalorder %s876_s4, %s650_s20  ;;  %s655_s27 = sshll.u32 %s783_s26, 4  ;;  %s656_s27 = int_to_ptr.vmem [resolvable:$false] %s655_s27 }
  0x27   : > { %s657_s28 = scalar_lea.vmem %s656_s27, 256  ;;  %p658_p9 = scmp.lt.s32.totalorder %s876_s4, %s656_s27 }
  0x28   : > { %p653_p6 = pnand %p651_p3, %p637_p5  ;;  %p659_p4 = scmp.lt.s32.totalorder %s657_s28, %s650_s20 }
  0x2a   : > { %p654_p11 = pneg %p653_p6  ;;  %p660_p10 = por %p659_p4, %p658_p9 }
  0x2c   : > { %p661_p12 = pnand %p660_p10, %p654_p11 }
  0x2e   : > { %664 = shalt.err (!%p661_p12)
}
  0x2f   : > { %565 = dma.hbm_to_vmem [thread:$0]  (!%p880_p0), %s874_s30, 128, %s876_s4, %s155_s6  }
  0x30   : > { %p1073_p1 = scmp.lt.s32.totalorder %s781_s14, 3  ;;  %p1074_p2 = scmp.ge.s32.totalorder %s781_s14, 1 }
  0x31   : > { %s541_s3 = sshll.u32 %s867_s25, 1  ;;  %s555_s7 = sshll.u32 %s777_s13, 5 }
  0x32   : > { %p916_p7 = pnand %p1074_p2, %p1073_p1  ;;  %s925_s16 = scalar_lea.hbm %s1064_s1, %s555_s7 }
  0x33   : > { %s182_s18 = scalar_lea.vmem [#allocation5], %s541_s3  ;;  %s179_s30 = scalar_lea.sflag [#allocation6], %s867_s25 }
  0x34   : > { %s1075_s29 = scalar_select %p916_p7, 1, 0 }
  0x35   : > { %s195_s19 = sshll.u32 %s182_s18, 4  ;;  %s665_s4 = scalar_lea.hbm %s925_s16, 32  ;;  %s196_s19 = int_to_ptr.vmem [resolvable:$true] %s195_s19 }
  0x36   : > { %p666_p9 = scmp.ne.s32.totalorder %s925_s16, %s665_s4  ;;  %s670_s26 = scalar_lea.hbm %s1064_s1, 64 }
  0x37   : > { %p671_p3 = scmp.lt.u32.totalorder %s925_s16, %s1064_s1  ;;  %p672_p6 = scmp.lt.u32.totalorder %s670_s26, %s665_s4 }
  0x38   : > { %p668_p11 = pnand %p666_p9, %p637_p5  ;;  %p674_p10 = scmp.lt.u32.totalorder %s665_s4, %s925_s16 }
  0x39   : > { %p673_p4 = por %p672_p6, %p671_p3 }
  0x3a   : > { %p669_p13 = pneg %p668_p11 }
  0x3b   : > { %p675_p12 = por %p674_p10, %p673_p4 }
  0x3d   : > { %p676_p1 = pnand %p675_p12, %p669_p13 }
  0x3f   : > { %679 = shalt.err (!%p676_p1)
}
  0x40   : > { %s680_s25 = scalar_lea.vmem %s196_s19, 32  ;;  %s784_s3 = smov [#allocation5]  }
  0x41   : > { %p681_p2 = scmp.ne.s32.totalorder %s196_s19, %s680_s25  ;;  %s685_s7 = sshll.u32 %s784_s3, 4  ;;  %s686_s7 = int_to_ptr.vmem [resolvable:$false] %s685_s7 }
  0x42   : > { %s687_s8 = scalar_lea.vmem %s686_s7, 64  ;;  %p688_p8 = scmp.lt.s32.totalorder %s196_s19, %s686_s7 }
  0x43   : > { %p683_p9 = pnand %p681_p2, %p637_p5  ;;  %p689_p7 = scmp.lt.s32.totalorder %s687_s8, %s680_s25 }
  0x45   : > { %p684_p11 = pneg %p683_p9  ;;  %p690_p3 = por %p689_p7, %p688_p8 }
  0x47   : > { %p691_p6 = pnand %p690_p3, %p684_p11 }
  0x49   : > { %694 = shalt.err (!%p691_p6)
}
  0x4a   : > { %568 = dma.hbm_to_vmem [thread:$0]  (!%p880_p0), %s925_s16, 32, %s196_s19, %s179_s30  }
  0x4b   : > { %p1076_p13 = scmp.ne.s32.totalorder %s1075_s29, 0 }
  0x4c   : > { %s950_s15 = sand.u32 (!%p1076_p13), 1, %s765_s10   ;;  %p1077_p5 = scmp.ne.s32.totalorder (!%p1076_p13), %s1069_s21, 0 }
  0x4d   : > { %204 = sbr.rel (%p1076_p13) target bundleno = 323 (0x143), region = 28  ;;  %s545_s18 = sshll.u32 (!%p1076_p13), %s950_s15, 3 }
  0x4e   : > { %s207_s4 = scalar_lea.sflag (!%p1076_p13), [#allocation3], %s950_s15  ;;  %s210_s6 = scalar_lea.vmem (!%p1076_p13), [#allocation2], %s545_s18 }
  0x54   : > { %748 = dma.done.wait (%p1077_p5), %s207_s4, 128  }
  0x55   : > { %750 = vsyncadd (%p1077_p5), %s207_s4, 4294967168  ;;  %s546_s5 = sshll.u32 %s950_s15, 1  ;;  %s216_s29 = scalar_lea.sflag [#allocation6], %s950_s15 }
  0x56   : > { %s219_s16 = scalar_lea.vmem [#allocation5], %s546_s5 }
  0x57   : > { %752 = dma.done.wait (%p1077_p5), %s216_s29, 32  }
  0x58   : > { %754 = vsyncadd (%p1077_p5), %s216_s29, 4294967264  ;;  %s547_s19 = sshll.u32 %s950_s15, 2  ;;  %vm257_vm0 = vcmask 27648   ;;  %v318_v0 = vlaneseq  ;;  %v785_v2 = vmov 0.0   ;;  %vm264_vm1 = vcmask 1043456   ;;  %v970_v8 = vld [vmem:[%s210_s6] sm:$0xff] }
  0x59   : > { %s965_s30 = scalar_lea.vmem [#allocation7], %s547_s19  ;;  %v260_v7 = vld [vmem:[%s219_s16] sm:$0x3]  ;;  %v974_v11 = vcombine.high %v970_v8, %v970_v8  ;;  %v265_v12 = vsel %vm264_vm1, %v970_v8, -inf  ;;  %vm379_vm4 = vcmask 24576   ;;  %s551_s21 = sshll.u32 %s773_s12, 6 }
  0x5a   : > { %v319_v1 = vshrl.u32 %v318_v0, 7  ;;  %258 = vst.msk [vmem:[%s965_s30] sm:$0xf] %vm257_vm0, %v785_v2  ;;  %v372_v3 = vand.u32 127, %v318_v0  ;;  %v266_v13 = vrot.slane %v265_v12, 4  ;;  %s423_s20 = sshll.u32 %s965_s30, 4  ;;  %s1012_s28 = scalar_lea.hbm %s1065_s2, %s551_s21  ;;  %s1014_s20 = int_to_ptr.vmem [resolvable:$true] %s423_s20 }
  0x5b   : > { %v272_v14 = vsel %vm264_vm1, %v974_v11, -inf  ;;  %s409_s12 = scalar_lea.sflag [#allocation4], %s950_s15  ;;  %s695_s25 = scalar_lea.vmem %s1014_s20, 64 }
  0x5c   : > { %v322_v4 = vsub.s32 0, %v319_v1  ;;  %v326_v5 = vsub.s32 1, %v319_v1  ;;  %v968_v6 = vsub.s32 %v372_v3, %v319_v1  ;;  %v267_v17 = vmax.f32 %v265_v12, %v266_v13  ;;  %p696_p8 = scmp.ne.s32.totalorder %s1014_s20, %s695_s25  ;;  %p1078_p0 = scmp.ne.s32.totalorder %s1070_s22, 0 }
  0x5d   : > { %v273_v18 = vrot.slane %v272_v14, 4  ;;  %s786_s3 = smov [#allocation7]  }
  0x5e   : > { %v323_v9 = vrot.slane %v260_v7, %v322_v4  ;;  %v327_v10 = vrot.slane %v260_v7, %v326_v5  ;;  %v268_v22 = vrot.slane %v267_v17, 2  ;;  %p697_p7 = pnand %p696_p8, %p1078_p0  ;;  %s699_s7 = sshll.u32 %s786_s3, 4  ;;  %s700_s7 = int_to_ptr.vmem [resolvable:$false] %s699_s7 }
  0x5f   : > { %v274_v23 = vmax.f32 %v272_v14, %v273_v18  ;;  %s701_s8 = scalar_lea.vmem %s700_s7, 128  ;;  %p702_p10 = scmp.lt.s32.totalorder %s1014_s20, %s700_s7 }
  0x60   : > { %vm328_vm2 = vcmp.eq.s32.totalorder %v319_v1, %v323_v9  ;;  %vm329_vm3 = vcmp.eq.s32.totalorder %v319_v1, %v327_v10  ;;  %v269_v24 = vmax.f32 %v267_v17, %v268_v22  ;;  %p698_p4 = pneg %p697_p7  ;;  %p703_p12 = scmp.lt.s32.totalorder %s701_s8, %s695_s25 }
  0x61   : > { %v548_v15 = vsel %vm328_vm2, 1.0, %v785_v2  ;;  %v549_v16 = vsel %vm329_vm3, 1.0, %v785_v2  ;;  %v275_v25 = vrot.slane %v274_v23, 2  ;;  %v399_v22 = vld [vmem:[%s965_s30 + $0x3] sm:$0x1] }
  0x62   : > { %v355_v19 = vsel %vm264_vm1, %v548_v15, 0.0  ;;  %v356_v20 = vsel %vm264_vm1, %v549_v16, 0.0  ;;  %v270_v26 = vrot.slane %v269_v24, 1  ;;  %v336_v56 = vcombine.low %v548_v15, %v549_v16  ;;  %p704_p1 = por %p703_p12, %p702_p10 }
  0x63   : > { %v357_v21 = vadd.f32 %v356_v20, %v355_v19  ;;  %v276_v27 = vmax.f32 %v274_v23, %v275_v25  ;;  %v369_v19 = vld [vmem:[%s965_s30] sm:$0x1] }
  0x64   : > { %v271_v28 = vmax.f32 %v269_v24, %v270_v26  ;;  %p705_p2 = pnand %p704_p1, %p698_p4 }
  0x65   : > { %358 = vadd.xlane.f32.xlu1 %v357_v21  ;;  %v277_v29 = vrot.slane %v276_v27, 1 }
  0x67   : > { %v278_v30 = vmax.f32 %v276_v27, %v277_v29  ;;  %v381_v27 = vld [vmem:[%s965_s30 + $0x1] sm:$0x1] }
  0x69   : > { %v281_v31 = vcombine.low %v271_v28, %v278_v30 }
  0x6b   : > { %v283_v32 = vsub.f32 %v970_v8, %v281_v31 }
  0x6d   : > { %v284_v33 = vmul.f32 1.442695, %v283_v32 }
  0x6f   : > { %625 = vpow2.f32 %v284_v33 }
  0x79   : > { %v626_v34 = vpop.eup %625 }
  0x7a   : > { %v287_v35 = vcombine.high %v626_v34, %v626_v34  ;;  %v289_v36 = vsel %vm264_vm1, %v626_v34, 0.0 }
  0x7b   : > { %v290_v37 = vrot.slane %v289_v36, 4 }
  0x7c   : > { %v296_v38 = vsel %vm264_vm1, %v287_v35, 0.0 }
  0x7d   : > { %v291_v39 = vadd.f32 %v290_v37, %v289_v36  ;;  %v297_v40 = vrot.slane %v296_v38, 4 }
  0x7f   : > { %v292_v41 = vrot.slane %v291_v39, 2  ;;  %v298_v42 = vadd.f32 %v297_v40, %v296_v38 }
  0x81   : > { %v293_v43 = vadd.f32 %v292_v41, %v291_v39  ;;  %v299_v44 = vrot.slane %v298_v42, 2 }
  0x83   : > { %v294_v45 = vrot.slane %v293_v43, 1  ;;  %v300_v46 = vadd.f32 %v299_v44, %v298_v42 }
  0x85   : > { %v295_v47 = vadd.f32 %v294_v45, %v293_v43  ;;  %v301_v48 = vrot.slane %v300_v46, 1 }
  0x87   : > { %v302_v49 = vadd.f32 %v301_v48, %v300_v46  ;;  %627 = vrcp.f32 %v295_v47 }
  0x88   : > { %629 = vlog2.f32 %v295_v47 }
  0x89   : > { %631 = vrcp.f32 %v302_v49 }
  0x8a   : > { %633 = vlog2.f32 %v302_v49 }
  0x91   : > { %v628_v50 = vpop.eup %627 }
  0x92   : > { %v630_v51 = vpop.eup %629 }
  0x93   : > { %v632_v52 = vpop.eup %631  ;;  %v313_v53 = vmul.f32 0.6931472, %v630_v51 }
  0x94   : > { %v634_v54 = vpop.eup %633  ;;  %v309_v55 = vcombine.low %v628_v50, %v632_v52 }
  0x95   : > { %v315_v57 = vmul.f32 0.6931472, %v634_v54  ;;  %v316_v58 = vadd.f32 %v313_v53, %v271_v28 }
  0x96   : > { %v311_v59 = vmul.f32 %v626_v34, %v309_v55 }
  0x97   : > { %v317_v60 = vadd.f32 %v315_v57, %v278_v30  ;;  %v360_v61 = vsub.f32 %v316_v58, %v970_v8 }
  0x98   : > { %v338_v62 = vmul.f32 %v336_v56, %v311_v59  ;;  %v348_v63 = vcombine.high %v311_v59, %v311_v59  ;;  %v350_v9 = vsel %vm264_vm1, %v311_v59, 0.0 }
  0x99   : > { %v361_v0 = vsub.f32 %v317_v60, %v974_v11  ;;  %v362_v1 = vmul.f32 %v548_v15, %v360_v61  ;;  %v390_v15 = vld [vmem:[%s965_s30 + $0x2] sm:$0x1] }
  0x9a   : > { %v340_v2 = vcombine.high %v338_v62, %v338_v62  ;;  %v342_v3 = vsel %vm264_vm1, %v338_v62, 0.0  ;;  %v351_v8 = vsel %vm264_vm1, %v348_v63, 0.0 }
  0x9b   : > { %v363_v4 = vmul.f32 %v549_v16, %v361_v0  ;;  %v364_v5 = vsel %vm264_vm1, %v362_v1, 0.0  ;;  %v352_v13 = vadd.f32 %v351_v8, %v350_v9 }
  0x9c   : > { %v343_v7 = vsel %vm264_vm1, %v340_v2, 0.0 }
  0x9d   : > { %v344_v10 = vadd.f32 %v343_v7, %v342_v3  ;;  %v365_v12 = vsel %vm264_vm1, %v363_v4, 0.0 }
  0x9e   : > { %v366_v11 = vadd.f32 %v365_v12, %v364_v5 }
  0x9f   : > { %345 = vadd.xlane.f32.xlu0 %v344_v10 }
  0xa0   : > { %367 = vadd.xlane.f32.xlu1 %v366_v11 }
  0xa3   : > { %353 = vadd.xlane.f32.xlu0 %v352_v13 }
  0xf2   : > { %v359_v14 = vpop.xlane.xlu1 %358 }
  0xf3   : > { %v395_v16 = vrot.slane %v359_v14, %v968_v6 }
  0xf5   : > { %v397_v17 = vadd.f32 %v395_v16, %v390_v15 }
  0xf7   : > { %398 = vst.msk [vmem:[%s965_s30 + $0x2] sm:$0x1] %vm379_vm4, %v397_v17 }
 0x12c   : > { %v346_v18 = vpop.xlane.xlu0 %345 }
 0x12d   : > { %v376_v20 = vrot.slane %v346_v18, %v968_v6  ;;  %v368_v21 = vpop.xlane.xlu1 %367 }
 0x12e   : > { %v404_v23 = vrot.slane %v368_v21, %v968_v6 }
 0x12f   : > { %v378_v24 = vadd.f32 %v376_v20, %v369_v19 }
 0x130   : > { %v406_v25 = vadd.f32 %v404_v23, %v399_v22  ;;  %v354_v26 = vpop.xlane.xlu0 %353 }
 0x131   : > { %380 = vst.msk [vmem:[%s965_s30] sm:$0x1] %vm379_vm4, %v378_v24  ;;  %v386_v28 = vrot.slane %v354_v26, %v968_v6 }
 0x132   : > { %407 = vst.msk [vmem:[%s965_s30 + $0x3] sm:$0x1] %vm379_vm4, %v406_v25 }
 0x133   : > { %v388_v29 = vadd.f32 %v386_v28, %v381_v27 }
 0x135   : > { %389 = vst.msk [vmem:[%s965_s30 + $0x1] sm:$0x1] %vm379_vm4, %v388_v29 }
 0x136   : > { %708 = shalt.err (!%p705_p2)
}
 0x137   : > { %s709_s15 = scalar_lea.hbm %s1012_s28, 64  ;;  %s713_s6 = scalar_lea.hbm %s1065_s2, 128 }
 0x138   : > { %p710_p9 = scmp.ne.s32.totalorder %s1012_s28, %s709_s15  ;;  %p714_p6 = scmp.lt.u32.totalorder %s1012_s28, %s1065_s2 }
 0x139   : > { %p715_p13 = scmp.lt.u32.totalorder %s713_s6, %s709_s15  ;;  %p717_p8 = scmp.lt.u32.totalorder %s709_s15, %s1012_s28 }
 0x13a   : > { %p711_p11 = pnand %p710_p9, %p1078_p0 }
 0x13b   : > { %p716_p5 = por %p715_p13, %p714_p6 }
 0x13c   : > { %p712_p3 = pneg %p711_p11 }
 0x13d   : > { %p718_p7 = por %p717_p8, %p716_p5 }
 0x13f   : > { %p719_p4 = pnand %p718_p7, %p712_p3 }
 0x141   : > { %722 = shalt.err (!%p719_p4)
}
 0x142   : > { %560 = dma.vmem_to_hbm [thread:$0]  (%p1078_p0), %s1014_s20, 64, %s1012_s28, %s409_s12  }
 0x143 PF: > { %s435_s16 = sand.u32 1, %s761_s9   ;;  %p1079_p10 = scmp.ne.s32.totalorder %s1071_s24, 0 }
 0x144   : > { %p1080_p12 = scmp.ge.s32.totalorder %s781_s14, 2  ;;  %s436_s19 = scalar_lea.sflag [#allocation4], %s435_s16 }
 0x146   : > { %p570_p1 = pnand %p1080_p12, %p1079_p10 }
 0x148   : > { %756 = dma.done.wait (!%p570_p1), %s436_s19, 64  }
 0x149   : > { %758 = vsyncadd (!%p570_p1), %s436_s19, 4294967232  ;;  %s21_s14 = sadd.s32 1, %s781_s14   ;;  %s1081_s9 = smov %s765_s10 }
 0x14a   : > { %p18_p2 = scmp.ge.s32.totalorder %s21_s14, 4   ;;  %s1082_s10 = smov %s769_s11 }
 0x14b   : > { %s1083_s11 = smov %s858_s23  ;;  %s1084_s12 = smov %s777_s13 }
 0x14c   : > { %s1085_s13 = smov %s1087_s17  ;;  %20 = sbr.rel (!%p18_p2) target bundleno = 8 (0x8), region = 90 }
 0x153   :  { %441 = vsyncpa [#allocation3], 1 }
 0x154   :  { %443 = vsyncpa [#allocation3 + $0x1], 1 }
 0x155   :  { %444 = vsyncpa [#allocation6], 1 }
 0x156   :  { %446 = vsyncpa [#allocation6 + $0x1], 1 }
 0x157   :  { %447 = vsyncpa [#allocation4], 1 }
 0x158   :  { %449 = vsyncpa [#allocation4 + $0x1], 1 }

</bundles_post_ra>
